<compile_context>
chip_gen: v6e
topology: v6e:2x2x1
jax: 0.10.0
libtpu: 0.0.40
codegen_flags: <defaults>
</compile_context>

<pallas_src>
import jax
import jax.numpy as jnp
from jax.experimental import pallas as pl
from jax.experimental.pallas import tpu as pltpu

LN_EPS = 1e-5
_TARGET_TILE_BYTES = 4 * 1024 * 1024       # per input stream, per buffer
_PER_TC_VMEM_FLOOR = 64 * 1024 * 1024      # v7x per-TensorCore VMEM


def addnorm_kernel(x_ref, y_ref, gamma_ref, beta_ref, o_ref):
    # x_ref, y_ref, o_ref: (block_rows, H); gamma_ref / beta_ref: (1, H).
    gamma = gamma_ref[...].astype(jnp.float32)
    beta = beta_ref[...].astype(jnp.float32)

    # One live f32 temporary (z); variance via E[z^2] - mean^2 (fine in f32 at
    # LayerNorm scales, clamped at 0 against rounding).
    z = x_ref[...].astype(jnp.float32) + y_ref[...].astype(jnp.float32)
    mean = jnp.mean(z, axis=-1, keepdims=True)
    mean_sq = jnp.mean(z * z, axis=-1, keepdims=True)
    var = jnp.maximum(mean_sq - mean * mean, 0.0)
    inv = jax.lax.rsqrt(var + LN_EPS)
    o_ref[...] = ((z - mean) * inv * gamma + beta).astype(o_ref.dtype)


def _round_up(x, m):
    return ((x + m - 1) // m) * m


def _vmem_capacity_bytes():
    # Per-TensorCore VMEM is 128 MiB on v5e/v6e and 64 MiB on v7x; the query
    # may report a per-chip value on multi-TC chips, so clamp to the 64 MiB
    # per-TC floor.  With ~4 MiB tiles the extra capacity on v5e/v6e would not
    # be used anyway.
    cap = _PER_TC_VMEM_FLOOR
    try:
        q = int(getattr(pltpu.get_tpu_info(), "vmem_capacity_bytes", 0))
        if q > 0:
            cap = min(q, _PER_TC_VMEM_FLOOR)
    except Exception:
        pass
    return cap


def _bytes_per_row(H, itemsize):
    # x / y / out tiles, double buffered, in the caller dtype, plus (a
    # conservative) two live f32 (block_rows, H) temporaries inside the body.
    return 3 * 2 * H * itemsize + 2 * H * 4


def _pick_block_rows(rows, H, itemsize, vmem_cap):
    if rows <= 8:
        return rows

    budget = vmem_cap // 2
    bpr = _bytes_per_row(H, itemsize)

    # Bytes-based target: ~4 MiB per input tile so the ~0.35 us per-grid-step
    # overhead is negligible against each step's HBM DMA time.
    cand = _TARGET_TILE_BYTES // max(H * itemsize, 1)
    cand = min(cand, budget // max(bpr, 1))
    cand = max(8, (cand // 8) * 8)
    # No bigger than the problem itself (tail handled by a masked partial block).
    cand = min(cand, max(8, (rows // 8) * 8))

    # Megacore (v7x: 2 TensorCores): with a small, odd step count one core
    # idles for a whole step; nudge towards an even split.  Never grows cand,
    # so the VMEM budget still holds; harmless on 1-TC chips.
    steps = pl.cdiv(rows, cand)
    if 1 < steps < 16 and steps % 2 == 1:
        cand = min(cand, max(8, _round_up(pl.cdiv(rows, steps + 1), 8)))
    return cand


def add_norm(X, Y, gamma, beta, *, block_rows=None):
    """AddNorm forward: layernorm(dropout(Y) + X).  X, Y: (B, S, H)."""
    B, S, H = X.shape
    rows = B * S
    itemsize = jnp.dtype(X.dtype).itemsize
    vmem_cap = _vmem_capacity_bytes()

    if block_rows is None:
        block_rows = _pick_block_rows(rows, H, itemsize, vmem_cap)

    x2 = X.reshape(rows, H)
    y2 = Y.reshape(rows, H)
    g2 = gamma.reshape(1, H)
    b2 = beta.reshape(1, H)

    # Partial tail block (rows % block_rows != 0) is masked by Pallas; no
    # padding copies and no output slice.
    grid = (pl.cdiv(rows, block_rows),)

    # Scoped VMEM limit: same per-row accounting as the block picker, plus
    # gamma/beta tiles and ~4 MiB headroom for Mosaic internal scratch.
    vmem_need = block_rows * _bytes_per_row(H, itemsize) + 4 * H * 4 + (4 << 20)
    vmem_limit = int(min(max(vmem_need, 32 << 20), vmem_cap))

    out = pl.pallas_call(
        addnorm_kernel,
        out_shape=jax.ShapeDtypeStruct((rows, H), X.dtype),
        grid_spec=pltpu.PrefetchScalarGridSpec(
            num_scalar_prefetch=0,
            grid=grid,
            in_specs=[
                pl.BlockSpec((block_rows, H), lambda i: (i, 0)),
                pl.BlockSpec((block_rows, H), lambda i: (i, 0)),
                pl.BlockSpec((1, H), lambda i: (0, 0)),
                pl.BlockSpec((1, H), lambda i: (0, 0)),
            ],
            out_specs=pl.BlockSpec((block_rows, H), lambda i: (i, 0)),
        ),
        compiler_params=pltpu.CompilerParams(
            dimension_semantics=("parallel",),
            vmem_limit_bytes=vmem_limit,
        ),
    )(x2, y2, g2, b2)

    return out.reshape(B, S, H)


def add_norm_ref(X, Y, gamma, beta):
    z = X.astype(jnp.float32) + Y.astype(jnp.float32)
    mean = jnp.mean(z, axis=-1, keepdims=True)
    var = jnp.mean((z - mean) ** 2, axis=-1, keepdims=True)
    zn = (z - mean) / jnp.sqrt(var + LN_EPS)
    return (zn * gamma + beta).astype(X.dtype)


if __name__ == "__main__":
    key = jax.random.PRNGKey(0)
    kx, ky, kg, kb = jax.random.split(key, 4)

    B, S, H = 2, 8, 32  # batch, seq, hidden (norm_shape = H)
    X = jax.random.normal(kx, (B, S, H), dtype=jnp.float32)
    Y = jax.random.normal(ky, (B, S, H), dtype=jnp.float32)

    # nn.LayerNorm default params are ones/zeros; perturb so gamma/beta matter.
    gamma = jnp.ones((H,), jnp.float32) + 0.01 * jax.random.normal(kg, (H,), jnp.float32)
    beta = 0.01 * jax.random.normal(kb, (H,), jnp.float32)

    out = add_norm(X, Y, gamma, beta)
    out = jax.block_until_ready(out)
    ref = add_norm_ref(X, Y, gamma, beta)
    assert out.shape == (B, S, H)
    assert jnp.allclose(out, ref, atol=1e-5, rtol=1e-5), "mismatch vs reference"

    # Exercise the no-pad partial-tail path (rows not divisible by block_rows):
    # rows = 18 -> block 16, grid 2, masked 2-row tail block.
    B2, S2 = 2, 9
    X2 = jax.random.normal(kx, (B2, S2, H), dtype=jnp.float32)
    Y2 = jax.random.normal(ky, (B2, S2, H), dtype=jnp.float32)
    out2 = jax.block_until_ready(add_norm(X2, Y2, gamma, beta))
    ref2 = add_norm_ref(X2, Y2, gamma, beta)
    assert jnp.allclose(out2, ref2, atol=1e-5, rtol=1e-5), "tail mismatch"

    print("KERNEL_OK")
</pallas_src>

<mosaic_0001>
module attributes {stable_mosaic.version = 11 : i64} {
  func.func @addnorm_kernel(%arg0: i32, %arg1: memref<16x32xf32, #tpu.memory_space<vmem>>, %arg2: memref<16x32xf32, #tpu.memory_space<vmem>>, %arg3: memref<1x32xf32, #tpu.memory_space<vmem>>, %arg4: memref<1x32xf32, #tpu.memory_space<vmem>>, %arg5: memref<16x32xf32, #tpu.memory_space<vmem>>) attributes {dimension_semantics = [#tpu.dimension_semantics<parallel>], iteration_bounds = array<i64: 1>, scalar_prefetch = 0 : i64, scratch_operands = 0 : i64, tpu.core_type = #tpu.core_type<tc>, window_params = [{transform_indices = @transform_0, window_bounds = array<i64: 16, 32>}, {transform_indices = @transform_1, window_bounds = array<i64: 16, 32>}, {pipeline_mode = #tpu.pipeline_mode<synchronous>, transform_indices = @transform_2, window_bounds = array<i64: 1, 32>}, {pipeline_mode = #tpu.pipeline_mode<synchronous>, transform_indices = @transform_3, window_bounds = array<i64: 1, 32>}, {transform_indices = @transform_4, window_bounds = array<i64: 16, 32>}]} {
    %c0 = arith.constant 0 : index
    %c0_0 = arith.constant 0 : index
    %0 = vector.load %arg3[%c0, %c0_0] : memref<1x32xf32, #tpu.memory_space<vmem>>, vector<1x32xf32>
    %c0_1 = arith.constant 0 : index
    %c0_2 = arith.constant 0 : index
    %1 = vector.load %arg4[%c0_1, %c0_2] : memref<1x32xf32, #tpu.memory_space<vmem>>, vector<1x32xf32>
    %c0_3 = arith.constant 0 : index
    %c0_4 = arith.constant 0 : index
    %2 = vector.load %arg1[%c0_3, %c0_4] : memref<16x32xf32, #tpu.memory_space<vmem>>, vector<16x32xf32>
    %c0_5 = arith.constant 0 : index
    %c0_6 = arith.constant 0 : index
    %3 = vector.load %arg2[%c0_5, %c0_6] : memref<16x32xf32, #tpu.memory_space<vmem>>, vector<16x32xf32>
    %4 = arith.addf %2, %3 : vector<16x32xf32>
    %cst = arith.constant dense<0.000000e+00> : vector<16xf32>
    %5 = vector.multi_reduction <add>, %4, %cst [1] : vector<16x32xf32> to vector<16xf32>
    %6 = vector.shape_cast %5 : vector<16xf32> to vector<16x1xf32>
    %cst_7 = arith.constant 3.200000e+01 : f32
    %7 = vector.broadcast %cst_7 : f32 to vector<16x1xf32>
    %8 = arith.divf %6, %7 : vector<16x1xf32>
    %9 = arith.mulf %4, %4 : vector<16x32xf32>
    %cst_8 = arith.constant dense<0.000000e+00> : vector<16xf32>
    %10 = vector.multi_reduction <add>, %9, %cst_8 [1] : vector<16x32xf32> to vector<16xf32>
    %11 = vector.shape_cast %10 : vector<16xf32> to vector<16x1xf32>
    %cst_9 = arith.constant 3.200000e+01 : f32
    %12 = vector.broadcast %cst_9 : f32 to vector<16x1xf32>
    %13 = arith.divf %11, %12 : vector<16x1xf32>
    %14 = arith.mulf %8, %8 : vector<16x1xf32>
    %15 = arith.subf %13, %14 : vector<16x1xf32>
    %cst_10 = arith.constant 0.000000e+00 : f32
    %16 = vector.broadcast %cst_10 : f32 to vector<16x1xf32>
    %17 = arith.maximumf %15, %16 : vector<16x1xf32>
    %cst_11 = arith.constant 9.99999974E-6 : f32
    %18 = vector.broadcast %cst_11 : f32 to vector<16x1xf32>
    %19 = arith.addf %17, %18 : vector<16x1xf32>
    %20 = math.rsqrt %19 : vector<16x1xf32>
    %21 = vector.broadcast %8 : vector<16x1xf32> to vector<16x32xf32>
    %22 = arith.subf %4, %21 : vector<16x32xf32>
    %23 = vector.broadcast %20 : vector<16x1xf32> to vector<16x32xf32>
    %24 = arith.mulf %22, %23 : vector<16x32xf32>
    %25 = vector.broadcast %0 : vector<1x32xf32> to vector<16x32xf32>
    %26 = arith.mulf %24, %25 : vector<16x32xf32>
    %27 = vector.broadcast %1 : vector<1x32xf32> to vector<16x32xf32>
    %28 = arith.addf %26, %27 : vector<16x32xf32>
    %c0_12 = arith.constant 0 : index
    %c0_13 = arith.constant 0 : index
    %29 = vector.load %arg5[%c0_12, %c0_13] : memref<16x32xf32, #tpu.memory_space<vmem>>, vector<16x32xf32>
    tpu.vector_store %arg5[%c0_12, %c0_13], %28 {strides = array<i32>} : memref<16x32xf32, #tpu.memory_space<vmem>>, vector<16x32xf32>,
    return
  }
  func.func @transform_0(%arg0: i32) -> (i32, i32) {
    %c0_i32 = arith.constant 0 : i32
    %c0_i32_0 = arith.constant 0 : i32
    return %arg0, %c0_i32 : i32, i32
  }
  func.func @transform_1(%arg0: i32) -> (i32, i32) {
    %c0_i32 = arith.constant 0 : i32
    %c0_i32_0 = arith.constant 0 : i32
    return %arg0, %c0_i32 : i32, i32
  }
  func.func @transform_2(%arg0: i32) -> (i32, i32) {
    %c0_i32 = arith.constant 0 : i32
    %c0_i32_0 = arith.constant 0 : i32
    %c0_i32_1 = arith.constant 0 : i32
    return %c0_i32, %c0_i32_0 : i32, i32
  }
  func.func @transform_3(%arg0: i32) -> (i32, i32) {
    %c0_i32 = arith.constant 0 : i32
    %c0_i32_0 = arith.constant 0 : i32
    %c0_i32_1 = arith.constant 0 : i32
    return %c0_i32, %c0_i32_0 : i32, i32
  }
  func.func @transform_4(%arg0: i32) -> (i32, i32) {
    %c0_i32 = arith.constant 0 : i32
    %c0_i32_0 = arith.constant 0 : i32
    return %arg0, %c0_i32 : i32, i32
  }
}

</mosaic_0001>

<bundles_post_ra>
// kernel: tpu_custom_call.1
= control target key start
LH: loop header
LB: loop body
LE: loop exit
PB: predicated region body
PF: predicated region fallthrough
CT: control target
= control target key end

     0   :  { %9 = vsyncpa [#allocation3], 0  ;;  %s261_s0 = inlined_call_operand.hbm [shape: f32[16,32], index: 0, kind: input, shape index: {}]   ;;  %s262_s1 = inlined_call_operand.hbm [shape: f32[16,32], index: 1, kind: input, shape index: {}]   ;;  %s263_s2 = inlined_call_operand.vmem [shape: f32[1,32], index: 2, kind: input, shape index: {}]   ;;  %s264_s3 = inlined_call_operand.vmem [shape: f32[1,32], index: 3, kind: input, shape index: {}]   ;;  %s265_s4 = inlined_call_operand.hbm [shape: f32[16,32], index: 4, kind: output, shape index: {}]  }
   0x1   :  { %10 = vsyncpa [#allocation6], 0 }
   0x2   :  { %11 = vsyncpa [#allocation4], 0  ;;  %s201_s15 = smov [#allocation2]  }
   0x3   :  { %s17_s16 = sshll.u32 %s201_s15, 4  ;;  %s18_s16 = int_to_ptr.vmem [resolvable:$true] %s17_s16 }
   0x4   :  { %s143_s17 = scalar_lea.vmem %s18_s16, 256  ;;  %p148_p1 = scmp.lt.s32.totalorder %s18_s16, %s18_s16 }
   0x5   :  { %p144_p0 = scmp.ne.s32.totalorder %s18_s16, %s143_s17  ;;  %p149_p2 = scmp.lt.s32.totalorder %s143_s17, %s143_s17 }
   0x7   :  { %p150_p3 = por %p149_p2, %p148_p1 }
   0x9   :  { %p151_p4 = pnand %p150_p3, %p144_p0 }
   0xb   :  { %154 = shalt.err (!%p151_p4)
}
   0xc   :  { %s202_s18 = smov 128   ;;  %s203_s19 = smov 8  }
   0xd   :  { %23 = dma.hbm_to_vmem [thread:$0]  %s261_s0, 256, %s18_s16, [#allocation3], %s202_s18, %s202_s18, %s203_s19  }
   0xe   :  { %s204_s22 = smov [#allocation5]  }
   0xf   :  { %s29_s23 = sshll.u32 %s204_s22, 4  ;;  %s30_s23 = int_to_ptr.vmem [resolvable:$true] %s29_s23 }
  0x10   :  { %s163_s24 = scalar_lea.vmem %s30_s23, 256  ;;  %p168_p6 = scmp.lt.s32.totalorder %s30_s23, %s30_s23 }
  0x11   :  { %p164_p5 = scmp.ne.s32.totalorder %s30_s23, %s163_s24  ;;  %p169_p7 = scmp.lt.s32.totalorder %s163_s24, %s163_s24 }
  0x13   :  { %p170_p8 = por %p169_p7, %p168_p6 }
  0x15   :  { %p171_p9 = pnand %p170_p8, %p164_p5 }
  0x17   :  { %174 = shalt.err (!%p171_p9)
}
  0x18   :  { %35 = dma.hbm_to_vmem [thread:$0]  %s262_s1, 256, %s30_s23, [#allocation6], %s202_s18, %s202_s18, %s203_s19  }
  0x19   :  { %195 = dma.done.wait [#allocation3], 256  }
  0x1a   :  { %196 = vsyncadd [#allocation3], 4294967040 }
  0x1b   :  { %197 = dma.done.wait [#allocation6], 256  }
  0x1c   :  { %198 = vsyncadd [#allocation6], 4294967040  ;;  %v48_v0 = vld [vmem:[#allocation2] sm:$0xff]  ;;  %v50_v1 = vld [vmem:[#allocation5] sm:$0xff]  ;;  %vm54_vm0 = vcmask 261120   ;;  %s205_s29 = smov [#allocation7]  }
  0x1d   :  { %v49_v2 = vld [vmem:[#allocation2 + $0x8] sm:$0xff]  ;;  %v52_v3 = vadd.f32 %v50_v1, %v48_v0  ;;  %v51_v4 = vld [vmem:[#allocation5 + $0x8] sm:$0xff]  ;;  %v124_v30 = vld [vmem:[%s263_s2] ss:$0 sm:$0xff]  ;;  %s111_s30 = sshll.u32 %s205_s29, 4  ;;  %s112_s30 = int_to_ptr.vmem [resolvable:$true] %s111_s30 }
  0x1e   :  { %v53_v5 = vadd.f32 %v51_v4, %v49_v2  ;;  %v125_v32 = vld [vmem:[%s264_s3] ss:$0 sm:$0xff]  ;;  %s175_s2 = scalar_lea.vmem %s112_s30, 256  ;;  %p180_p11 = scmp.lt.s32.totalorder %s112_s30, %s112_s30 }
  0x1f   :  { %v55_v6 = vsel %vm54_vm0, %v52_v3, 0.0  ;;  %v64_v7 = vmul.f32 %v52_v3, %v52_v3  ;;  %p176_p10 = scmp.ne.s32.totalorder %s112_s30, %s175_s2  ;;  %p181_p12 = scmp.lt.s32.totalorder %s175_s2, %s175_s2 }
  0x20   :  { %56 = vadd.xlane.f32.xlu0 %v55_v6  ;;  %v65_v8 = vmul.f32 %v53_v5, %v53_v5  ;;  %v58_v10 = vsel %vm54_vm0, %v53_v5, 0.0 }
  0x21   :  { %v66_v9 = vsel %vm54_vm0, %v64_v7, 0.0  ;;  %p182_p13 = por %p181_p12, %p180_p11 }
  0x22   :  { %67 = vadd.xlane.f32.xlu1 %v66_v9  ;;  %v69_v11 = vsel %vm54_vm0, %v65_v8, 0.0 }
  0x23   :  { %p183_p0 = pnand %p182_p13, %p176_p10 }
  0x24   :  { %59 = vadd.xlane.f32.xlu0 %v58_v10 }
  0x26   :  { %70 = vadd.xlane.f32.xlu1 %v69_v11 }
  0xa9   :  { %v57_v12 = vpop.xlane.xlu0 %56 }
  0xaa   :  { %v62_v13 = vmul.f32 0.03125, %v57_v12 }
  0xab   :  { %v68_v14 = vpop.xlane.xlu1 %67 }
  0xac   :  { %v74_v15 = vmul.f32 %v62_v13, %v62_v13  ;;  %v72_v16 = vmul.f32 0.03125, %v68_v14  ;;  %v84_v28 = vsub.f32 %v52_v3, %v62_v13 }
  0xad   :  { %v60_v17 = vpop.xlane.xlu0 %59 }
  0xae   :  { %v76_v18 = vsub.f32 %v72_v16, %v74_v15  ;;  %v63_v19 = vmul.f32 0.03125, %v60_v17 }
  0xaf   :  { %v71_v20 = vpop.xlane.xlu1 %70 }
  0xb0   :  { %v78_v21 = vmax.f32 %v76_v18, 0.0  ;;  %v75_v22 = vmul.f32 %v63_v19, %v63_v19  ;;  %v73_v23 = vmul.f32 0.03125, %v71_v20  ;;  %v85_v33 = vsub.f32 %v53_v5, %v63_v19 }
  0xb2   :  { %v80_v24 = vadd.f32 1e-05, %v78_v21  ;;  %v77_v25 = vsub.f32 %v73_v23, %v75_v22 }
  0xb4   :  { %131 = vrsqrt.f32 %v80_v24  ;;  %v79_v26 = vmax.f32 %v77_v25, 0.0 }
  0xb6   :  { %v81_v27 = vadd.f32 1e-05, %v79_v26 }
  0xb8   :  { %133 = vrsqrt.f32 %v81_v27 }
  0xc1   :  { %v132_v29 = vpop.eup %131 }
  0xc2   :  { %v86_v31 = vmul.f32 %v132_v29, %v84_v28 }
  0xc4   :  { %v94_v34 = vmul.f32 %v124_v30, %v86_v31 }
  0xc5   :  { %v134_v35 = vpop.eup %133 }
  0xc6   :  { %v87_v36 = vmul.f32 %v134_v35, %v85_v33  ;;  %v102_v37 = vadd.f32 %v125_v32, %v94_v34 }
  0xc8   :  { %v95_v38 = vmul.f32 %v124_v30, %v87_v36  ;;  %104 = vst.msk [vmem:[#allocation7] sm:$0xff] %vm54_vm0, %v102_v37 }
  0xca   :  { %v103_v39 = vadd.f32 %v125_v32, %v95_v38 }
  0xcc   :  { %105 = vst.msk [vmem:[#allocation7 + $0x8] sm:$0xff] %vm54_vm0, %v103_v39 }
  0xcd   :  { %186 = shalt.err (!%p183_p0)
}
  0xce   :  { %117 = dma.vmem_to_hbm [thread:$0]  %s112_s30, 256, %s265_s4, [#allocation4], %s202_s18, %s202_s18, %s203_s19  }
  0xcf   :  { %199 = dma.done.wait [#allocation4], 256  }
  0xd0   :  { %200 = vsyncadd [#allocation4], 4294967040 }
  0xd1   :  { %121 = vsyncpa [#allocation3], 1 }
  0xd2   :  { %122 = vsyncpa [#allocation6], 1 }
  0xd3   :  { %123 = vsyncpa [#allocation4], 1 }

</bundles_post_ra>
